<compile_context>
chip_gen: v5e
topology: v5e:2x2
jax: 0.10.0
libtpu: 0.0.40
codegen_flags: <defaults>
</compile_context>

<pallas_src>
import jax
import jax.numpy as jnp
from jax.experimental import pallas as pl
from jax.experimental.pallas import tpu as pltpu


def _round_up(n, m):
    return ((n + m - 1) // m) * m


def _encoder_kernel(x_ref, w1_ref, b1_ref, w2m_ref, w2v_ref, b2m_ref, b2v_ref,
                    eps_ref, out_ref, *, latent_pad):
    # Hidden layer: (TM, Din_p)bf16 @ (Din_p, H_p)bf16 -> f32 acc, + bias, ReLU.
    h = jnp.dot(x_ref[...], w1_ref[...],
                preferred_element_type=jnp.float32) + b1_ref[...]
    h = jnp.maximum(h, 0.0)
    h_bf = h.astype(jnp.bfloat16)

    # Output layer, split into lane-aligned mu / log_var halves (two dots,
    # no in-kernel slice of a fused h1 at a sub-128 column).
    mu = jnp.dot(h_bf, w2m_ref[...],
                 preferred_element_type=jnp.float32) + b2m_ref[...]
    log_var = jnp.dot(h_bf, w2v_ref[...],
                      preferred_element_type=jnp.float32) + b2v_ref[...]

    # Reparameterization trick (f32 element-wise path, EUP exp).
    std = jnp.exp(0.5 * log_var)
    z = eps_ref[...] * std + mu

    # Single lane-dense output slab: [ z | mu | log_var ], 128-aligned slices.
    out_ref[:, 0 * latent_pad:1 * latent_pad] = z
    out_ref[:, 1 * latent_pad:2 * latent_pad] = mu
    out_ref[:, 2 * latent_pad:3 * latent_pad] = log_var


def encoder_forward(x, w1, b1, w2, b2, eps, latent_dim):
    """Full Encoder forward (Linear->ReLU->Linear + reparameterize) in Pallas.

    x:   (B, in_dim) f32        w1: (in_dim, layer_1d)      b1: (layer_1d,) or (1, layer_1d)
    w2:  (layer_1d, 2*latent)   b2: (2*latent,) or (1, 2*latent)
    eps: (B, latent) f32  (plays the role of torch.randn_like(std))
    Returns (z, mu, log_var), each (B, latent) f32.
    """
    batch, in_dim = x.shape
    layer_1d = w1.shape[1]
    b1 = b1.reshape(1, -1)
    b2 = b2.reshape(1, -1)

    # --- padded (lane-dense) sizes -----------------------------------------
    din_p = _round_up(in_dim, 128)
    h_p = _round_up(layer_1d, 128)
    l_p = _round_up(latent_dim, 128)
    tm = min(256, _round_up(batch, 8))          # batch tile (sublane multiple)
    b_p = _round_up(batch, tm)

    f32 = jnp.float32
    bf16 = jnp.bfloat16

    # --- pad + cast operands in the wrapper --------------------------------
    x_p = jnp.zeros((b_p, din_p), bf16).at[:batch, :in_dim].set(x.astype(bf16))
    eps_p = jnp.zeros((b_p, l_p), f32).at[:batch, :latent_dim].set(eps)

    w1_p = jnp.zeros((din_p, h_p), bf16).at[:in_dim, :layer_1d].set(w1.astype(bf16))
    b1_p = jnp.zeros((1, h_p), f32).at[:, :layer_1d].set(b1)

    # Split W2 / b2 into mu / log_var halves -> lane-aligned outputs.
    w2_mu = jnp.zeros((h_p, l_p), bf16).at[:layer_1d, :latent_dim].set(
        w2[:, :latent_dim].astype(bf16))
    w2_lv = jnp.zeros((h_p, l_p), bf16).at[:layer_1d, :latent_dim].set(
        w2[:, latent_dim:].astype(bf16))
    b2_mu = jnp.zeros((1, l_p), f32).at[:, :latent_dim].set(b2[:, :latent_dim])
    b2_lv = jnp.zeros((1, l_p), f32).at[:, :latent_dim].set(b2[:, latent_dim:])

    # --- pallas_call: batch grid, resident weights, fused output slab ------
    grid = (b_p // tm,)
    kernel = lambda *refs: _encoder_kernel(*refs, latent_pad=l_p)

    out = pl.pallas_call(
        kernel,
        out_shape=jax.ShapeDtypeStruct((b_p, 3 * l_p), f32),
        grid_spec=pltpu.PrefetchScalarGridSpec(
            num_scalar_prefetch=0,
            grid=grid,
            in_specs=[
                pl.BlockSpec((tm, din_p), lambda i: (i, 0)),   # x (batch-tiled)
                pl.BlockSpec((din_p, h_p), lambda i: (0, 0)),  # w1 (resident)
                pl.BlockSpec((1, h_p), lambda i: (0, 0)),      # b1
                pl.BlockSpec((h_p, l_p), lambda i: (0, 0)),    # w2_mu
                pl.BlockSpec((h_p, l_p), lambda i: (0, 0)),    # w2_lv
                pl.BlockSpec((1, l_p), lambda i: (0, 0)),      # b2_mu
                pl.BlockSpec((1, l_p), lambda i: (0, 0)),      # b2_lv
                pl.BlockSpec((tm, l_p), lambda i: (i, 0)),     # eps (batch-tiled)
            ],
            out_specs=pl.BlockSpec((tm, 3 * l_p), lambda i: (i, 0)),
        ),
        compiler_params=pltpu.CompilerParams(
            dimension_semantics=("parallel",)),
    )(x_p, w1_p, b1_p, w2_mu, w2_lv, b2_mu, b2_lv, eps_p)

    # --- slice the real views out of the padded slab ------------------------
    z = out[:batch, 0 * l_p:0 * l_p + latent_dim]
    mu = out[:batch, 1 * l_p:1 * l_p + latent_dim]
    log_var = out[:batch, 2 * l_p:2 * l_p + latent_dim]
    return z, mu, log_var


def init_encoder_params(key, in_dimension, layer_1d, latent_dimension):
    """Synthetic init mimicking nn.Linear's uniform fan-in init.

    Weights are stored transposed relative to PyTorch ((in, out)) so the
    kernel computes x @ W directly.
    """
    output_dimension = latent_dimension * 2
    k1, k2, k3, k4 = jax.random.split(key, 4)
    bound1 = 1.0 / jnp.sqrt(in_dimension)
    bound2 = 1.0 / jnp.sqrt(layer_1d)
    w1 = jax.random.uniform(k1, (in_dimension, layer_1d), jnp.float32,
                            minval=-bound1, maxval=bound1)
    b1 = jax.random.uniform(k2, (1, layer_1d), jnp.float32,
                            minval=-bound1, maxval=bound1)
    w2 = jax.random.uniform(k3, (layer_1d, output_dimension), jnp.float32,
                            minval=-bound2, maxval=bound2)
    b2 = jax.random.uniform(k4, (1, output_dimension), jnp.float32,
                            minval=-bound2, maxval=bound2)
    return w1, b1, w2, b2


def reference_forward(x, w1, b1, w2, b2, eps, latent_dim):
    """Pure-JAX f32 reference of the PyTorch Encoder.forward."""
    h = jnp.maximum(x @ w1 + b1, 0.0)
    h1 = h @ w2 + b2
    mu = h1[..., :latent_dim]
    log_var = h1[..., latent_dim:]
    std = jnp.exp(0.5 * log_var)
    z = eps * std + mu
    return z, mu, log_var


if __name__ == "__main__":
    # Small shapes consistent with the module's fully-connected forward.
    batch = 8
    in_dimension = 32
    layer_1d = 64
    latent_dimension = 16

    key = jax.random.PRNGKey(0)
    k_x, k_params, k_eps = jax.random.split(key, 3)

    x = jax.random.normal(k_x, (batch, in_dimension), jnp.float32)
    w1, b1, w2, b2 = init_encoder_params(
        k_params, in_dimension, layer_1d, latent_dimension)
    # eps plays the role of torch.randn_like(std): deterministic here.
    eps = jax.random.normal(k_eps, (batch, latent_dimension), jnp.float32)

    z, mu, log_var = encoder_forward(x, w1, b1, w2, b2, eps, latent_dimension)
    jax.block_until_ready((z, mu, log_var))

    z_ref, mu_ref, lv_ref = reference_forward(
        x, w1, b1, w2, b2, eps, latent_dimension)

    # bf16 matmul inputs (f32 accumulate) -> compare against the f32 reference
    # with correspondingly loosened tolerances.
    assert z.shape == (batch, latent_dimension)
    assert mu.shape == (batch, latent_dimension)
    assert log_var.shape == (batch, latent_dimension)
    assert jnp.allclose(z, z_ref, atol=2e-2, rtol=2e-2), float(
        jnp.max(jnp.abs(z - z_ref)))
    assert jnp.allclose(mu, mu_ref, atol=2e-2, rtol=2e-2), float(
        jnp.max(jnp.abs(mu - mu_ref)))
    assert jnp.allclose(log_var, lv_ref, atol=2e-2, rtol=2e-2), float(
        jnp.max(jnp.abs(log_var - lv_ref)))

    print("KERNEL_OK")
</pallas_src>

<mosaic_0001>
module attributes {stable_mosaic.version = 11 : i64} {
  func.func @_lambda_(%arg0: i32, %arg1: memref<8x128xbf16, #tpu.memory_space<vmem>>, %arg2: memref<128x128xbf16, #tpu.memory_space<vmem>>, %arg3: memref<1x128xf32, #tpu.memory_space<vmem>>, %arg4: memref<128x128xbf16, #tpu.memory_space<vmem>>, %arg5: memref<128x128xbf16, #tpu.memory_space<vmem>>, %arg6: memref<1x128xf32, #tpu.memory_space<vmem>>, %arg7: memref<1x128xf32, #tpu.memory_space<vmem>>, %arg8: memref<8x128xf32, #tpu.memory_space<vmem>>, %arg9: memref<8x384xf32, #tpu.memory_space<vmem>>) attributes {dimension_semantics = [#tpu.dimension_semantics<parallel>], iteration_bounds = array<i64: 1>, scalar_prefetch = 0 : i64, scratch_operands = 0 : i64, tpu.core_type = #tpu.core_type<tc>, window_params = [{transform_indices = @transform_0, window_bounds = array<i64: 8, 128>}, {pipeline_mode = #tpu.pipeline_mode<synchronous>, transform_indices = @transform_1, window_bounds = array<i64: 128, 128>}, {pipeline_mode = #tpu.pipeline_mode<synchronous>, transform_indices = @transform_2, window_bounds = array<i64: 1, 128>}, {pipeline_mode = #tpu.pipeline_mode<synchronous>, transform_indices = @transform_3, window_bounds = array<i64: 128, 128>}, {pipeline_mode = #tpu.pipeline_mode<synchronous>, transform_indices = @transform_4, window_bounds = array<i64: 128, 128>}, {pipeline_mode = #tpu.pipeline_mode<synchronous>, transform_indices = @transform_5, window_bounds = array<i64: 1, 128>}, {pipeline_mode = #tpu.pipeline_mode<synchronous>, transform_indices = @transform_6, window_bounds = array<i64: 1, 128>}, {transform_indices = @transform_7, window_bounds = array<i64: 8, 128>}, {transform_indices = @transform_8, window_bounds = array<i64: 8, 384>}]} {
    %c0 = arith.constant 0 : index
    %c0_0 = arith.constant 0 : index
    %0 = vector.load %arg1[%c0, %c0_0] : memref<8x128xbf16, #tpu.memory_space<vmem>>, vector<8x128xbf16>
    %c0_1 = arith.constant 0 : index
    %c0_2 = arith.constant 0 : index
    %1 = vector.load %arg2[%c0_1, %c0_2] : memref<128x128xbf16, #tpu.memory_space<vmem>>, vector<128x128xbf16>
    %cst = arith.constant dense<0.000000e+00> : vector<8x128xf32>
    %2 = tpu.matmul %0, %1, %cst {dimension_numbers = #tpu.dot_dimension_numbers<[1], [0], [0], [1], [0, 0, 1, 1], [], []>} : vector<8x128xbf16>, vector<128x128xbf16>, vector<8x128xf32> -> vector<8x128xf32>
    %c0_3 = arith.constant 0 : index
    %c0_4 = arith.constant 0 : index
    %3 = vector.load %arg3[%c0_3, %c0_4] : memref<1x128xf32, #tpu.memory_space<vmem>>, vector<1x128xf32>
    %4 = vector.broadcast %3 : vector<1x128xf32> to vector<8x128xf32>
    %5 = arith.addf %2, %4 : vector<8x128xf32>
    %cst_5 = arith.constant 0.000000e+00 : f32
    %6 = vector.broadcast %cst_5 : f32 to vector<8x128xf32>
    %7 = arith.maximumf %5, %6 : vector<8x128xf32>
    %8 = arith.truncf %7 : vector<8x128xf32> to vector<8x128xbf16>
    %c0_6 = arith.constant 0 : index
    %c0_7 = arith.constant 0 : index
    %9 = vector.load %arg4[%c0_6, %c0_7] : memref<128x128xbf16, #tpu.memory_space<vmem>>, vector<128x128xbf16>
    %cst_8 = arith.constant dense<0.000000e+00> : vector<8x128xf32>
    %10 = tpu.matmul %8, %9, %cst_8 {dimension_numbers = #tpu.dot_dimension_numbers<[1], [0], [0], [1], [0, 0, 1, 1], [], []>} : vector<8x128xbf16>, vector<128x128xbf16>, vector<8x128xf32> -> vector<8x128xf32>
    %c0_9 = arith.constant 0 : index
    %c0_10 = arith.constant 0 : index
    %11 = vector.load %arg6[%c0_9, %c0_10] : memref<1x128xf32, #tpu.memory_space<vmem>>, vector<1x128xf32>
    %12 = vector.broadcast %11 : vector<1x128xf32> to vector<8x128xf32>
    %13 = arith.addf %10, %12 : vector<8x128xf32>
    %c0_11 = arith.constant 0 : index
    %c0_12 = arith.constant 0 : index
    %14 = vector.load %arg5[%c0_11, %c0_12] : memref<128x128xbf16, #tpu.memory_space<vmem>>, vector<128x128xbf16>
    %cst_13 = arith.constant dense<0.000000e+00> : vector<8x128xf32>
    %15 = tpu.matmul %8, %14, %cst_13 {dimension_numbers = #tpu.dot_dimension_numbers<[1], [0], [0], [1], [0, 0, 1, 1], [], []>} : vector<8x128xbf16>, vector<128x128xbf16>, vector<8x128xf32> -> vector<8x128xf32>
    %c0_14 = arith.constant 0 : index
    %c0_15 = arith.constant 0 : index
    %16 = vector.load %arg7[%c0_14, %c0_15] : memref<1x128xf32, #tpu.memory_space<vmem>>, vector<1x128xf32>
    %17 = vector.broadcast %16 : vector<1x128xf32> to vector<8x128xf32>
    %18 = arith.addf %15, %17 : vector<8x128xf32>
    %cst_16 = arith.constant 5.000000e-01 : f32
    %19 = vector.broadcast %cst_16 : f32 to vector<8x128xf32>
    %20 = arith.mulf %19, %18 : vector<8x128xf32>
    %21 = math.exp %20 : vector<8x128xf32>
    %c0_17 = arith.constant 0 : index
    %c0_18 = arith.constant 0 : index
    %22 = vector.load %arg8[%c0_17, %c0_18] : memref<8x128xf32, #tpu.memory_space<vmem>>, vector<8x128xf32>
    %23 = arith.mulf %22, %21 : vector<8x128xf32>
    %24 = arith.addf %23, %13 : vector<8x128xf32>
    %c0_19 = arith.constant 0 : index
    %c0_20 = arith.constant 0 : index
    %25 = vector.load %arg9[%c0_19, %c0_20] : memref<8x384xf32, #tpu.memory_space<vmem>>, vector<8x128xf32>
    tpu.vector_store %arg9[%c0_19, %c0_20], %24 {strides = array<i32>} : memref<8x384xf32, #tpu.memory_space<vmem>>, vector<8x128xf32>,
    %c0_21 = arith.constant 0 : index
    %c128 = arith.constant 128 : index
    %26 = vector.load %arg9[%c0_21, %c128] : memref<8x384xf32, #tpu.memory_space<vmem>>, vector<8x128xf32>
    tpu.vector_store %arg9[%c0_21, %c128], %13 {strides = array<i32>} : memref<8x384xf32, #tpu.memory_space<vmem>>, vector<8x128xf32>,
    %c0_22 = arith.constant 0 : index
    %c256 = arith.constant 256 : index
    %27 = vector.load %arg9[%c0_22, %c256] : memref<8x384xf32, #tpu.memory_space<vmem>>, vector<8x128xf32>
    tpu.vector_store %arg9[%c0_22, %c256], %18 {strides = array<i32>} : memref<8x384xf32, #tpu.memory_space<vmem>>, vector<8x128xf32>,
    return
  }
  func.func @transform_0(%arg0: i32) -> (i32, i32) {
    %c0_i32 = arith.constant 0 : i32
    %c0_i32_0 = arith.constant 0 : i32
    return %arg0, %c0_i32 : i32, i32
  }
  func.func @transform_1(%arg0: i32) -> (i32, i32) {
    %c0_i32 = arith.constant 0 : i32
    %c0_i32_0 = arith.constant 0 : i32
    %c0_i32_1 = arith.constant 0 : i32
    return %c0_i32, %c0_i32_0 : i32, i32
  }
  func.func @transform_2(%arg0: i32) -> (i32, i32) {
    %c0_i32 = arith.constant 0 : i32
    %c0_i32_0 = arith.constant 0 : i32
    %c0_i32_1 = arith.constant 0 : i32
    return %c0_i32, %c0_i32_0 : i32, i32
  }
  func.func @transform_3(%arg0: i32) -> (i32, i32) {
    %c0_i32 = arith.constant 0 : i32
    %c0_i32_0 = arith.constant 0 : i32
    %c0_i32_1 = arith.constant 0 : i32
    return %c0_i32, %c0_i32_0 : i32, i32
  }
  func.func @transform_4(%arg0: i32) -> (i32, i32) {
    %c0_i32 = arith.constant 0 : i32
    %c0_i32_0 = arith.constant 0 : i32
    %c0_i32_1 = arith.constant 0 : i32
    return %c0_i32, %c0_i32_0 : i32, i32
  }
  func.func @transform_5(%arg0: i32) -> (i32, i32) {
    %c0_i32 = arith.constant 0 : i32
    %c0_i32_0 = arith.constant 0 : i32
    %c0_i32_1 = arith.constant 0 : i32
    return %c0_i32, %c0_i32_0 : i32, i32
  }
  func.func @transform_6(%arg0: i32) -> (i32, i32) {
    %c0_i32 = arith.constant 0 : i32
    %c0_i32_0 = arith.constant 0 : i32
    %c0_i32_1 = arith.constant 0 : i32
    return %c0_i32, %c0_i32_0 : i32, i32
  }
  func.func @transform_7(%arg0: i32) -> (i32, i32) {
    %c0_i32 = arith.constant 0 : i32
    %c0_i32_0 = arith.constant 0 : i32
    return %arg0, %c0_i32 : i32, i32
  }
  func.func @transform_8(%arg0: i32) -> (i32, i32) {
    %c0_i32 = arith.constant 0 : i32
    %c0_i32_0 = arith.constant 0 : i32
    return %arg0, %c0_i32 : i32, i32
  }
}

</mosaic_0001>

<bundles_post_ra>
// kernel: tpu_custom_call.1
= control target key start
LH: loop header
LB: loop body
LE: loop exit
PB: predicated region body
PF: predicated region fallthrough
CT: control target
= control target key end

     0   :  { %13 = vsyncpa [#allocation3], 0  ;;  %s743_s0 = inlined_call_operand.hbm [shape: bf16[8,128], index: 0, kind: input, shape index: {}]   ;;  %s744_s1 = inlined_call_operand.hbm [shape: bf16[128,128], index: 1, kind: input, shape index: {}]   ;;  %s745_s2 = inlined_call_operand.vmem [shape: f32[1,128], index: 2, kind: input, shape index: {}]   ;;  %s746_s3 = inlined_call_operand.hbm [shape: bf16[128,128], index: 3, kind: input, shape index: {}]   ;;  %s747_s4 = inlined_call_operand.hbm [shape: bf16[128,128], index: 4, kind: input, shape index: {}]   ;;  %s748_s5 = inlined_call_operand.vmem [shape: f32[1,128], index: 5, kind: input, shape index: {}]   ;;  %s749_s6 = inlined_call_operand.vmem [shape: f32[1,128], index: 6, kind: input, shape index: {}]   ;;  %s750_s7 = inlined_call_operand.hbm [shape: f32[8,128], index: 7, kind: input, shape index: {}]   ;;  %s751_s8 = inlined_call_operand.hbm [shape: f32[8,384], index: 8, kind: output, shape index: {}]  }
   0x1   :  { %14 = vsyncpa [#allocation6], 0 }
   0x2   :  { %15 = vsyncpa [#allocation9], 0  ;;  %s32_s29 = sshll.u32 %s744_s1, 4  ;;  %s33_s29 = int_to_ptr.hbm [resolvable:$true] %s32_s29 }
   0x3   :  { %16 = vsyncpa [#allocation4], 0  ;;  %s663_s30 = smov [#allocation5]   ;;  %s60_s12 = sshll.u32 %s747_s4, 4  ;;  %s61_s12 = int_to_ptr.hbm [resolvable:$true] %s60_s12 }
   0x4   :  { %s34_s9 = sshll.u32 %s663_s30, 4  ;;  %s664_s13 = smov 64   ;;  %s35_s9 = int_to_ptr.vmem [resolvable:$true] %s34_s9 }
   0x5   :  { %s665_s14 = smov 4   ;;  %s666_s15 = smov [#allocation8]  }
   0x6   :  { %40 = dma.hbm_to_vmem [thread:$0]  %s33_s29, 1024, %s35_s9, [#allocation6], %s664_s13, %s664_s13, %s665_s14  }
   0x7   :  { %s62_s16 = sshll.u32 %s666_s15, 4  ;;  %s22_s19 = sshll.u32 %s743_s0, 4  ;;  %s63_s16 = int_to_ptr.vmem [resolvable:$true] %s62_s16  ;;  %s23_s19 = int_to_ptr.hbm [resolvable:$true] %s22_s19 }
   0x8   :  { %68 = dma.hbm_to_vmem [thread:$0]  %s61_s12, 1024, %s63_s16, [#allocation9], %s664_s13, %s664_s13, %s665_s14  }
   0x9   :  { %s47_s21 = sshll.u32 %s746_s3, 4  ;;  %s667_s22 = smov [#allocation2]   ;;  %s48_s21 = int_to_ptr.hbm [resolvable:$true] %s47_s21 }
   0xa   :  { %s24_s23 = sshll.u32 %s667_s22, 4  ;;  %s668_s4 = smov [#allocation7]   ;;  %s25_s23 = int_to_ptr.vmem [resolvable:$true] %s24_s23 }
   0xb   :  { %27 = dma.hbm_to_vmem [thread:$0]  %s23_s19, 64, %s25_s23, [#allocation3]  }
   0xc   :  { %s49_s24 = sshll.u32 %s668_s4, 4  ;;  %s78_s27 = sshll.u32 %s750_s7, 4  ;;  %s50_s24 = int_to_ptr.vmem [resolvable:$true] %s49_s24  ;;  %s79_s27 = int_to_ptr.hbm [resolvable:$true] %s78_s27 }
   0xd   :  { %55 = dma.hbm_to_vmem [thread:$0]  %s48_s21, 1024, %s50_s24, [#allocation6], %s664_s13, %s664_s13, %s665_s14  }
   0xe   :  { %s669_s0 = smov [#allocation10]  }
   0xf   :  { %s80_s28 = sshll.u32 %s669_s0, 4  ;;  %s81_s28 = int_to_ptr.vmem [resolvable:$true] %s80_s28 }
  0x10   :  { %83 = dma.hbm_to_vmem [thread:$0]  %s79_s27, 128, %s81_s28, [#allocation9]  }
  0x11   :  { %655 = dma.done.wait [#allocation3], 64  }
  0x12   :  { %656 = vsyncadd [#allocation3], 4294967232 }
  0x13   :  { %657 = dma.done.wait [#allocation6], 2048  }
  0x14   :  { %658 = vsyncadd [#allocation6], 4294965248 }
  0x15   :  { %659 = dma.done.wait [#allocation9], 1152  }
  0x16   :  { %660 = vsyncadd [#allocation9], 4294966144  ;;  %v481_v0 = vld [vmem:[#allocation5 + $0x38] sm:$0xff]  ;;  %v480_v1 = vld [vmem:[#allocation5 + $0x30] sm:$0xff]  ;;  %s366_s13 = sshll.u32 %s751_s8, 4  ;;  %s367_s13 = int_to_ptr.hbm [resolvable:$true] %s366_s13 }
  0x17   :  { %173 = vmatpush.bf16.msra.mxu0 %v481_v0  ;;  %v489_v2 = vld [vmem:[#allocation7 + $0x38] sm:$0xff]  ;;  %v488_v4 = vld [vmem:[#allocation7 + $0x30] sm:$0xff]  ;;  %v479_v6 = vld [vmem:[#allocation5 + $0x28] sm:$0xff] }
  0x18   :  { %v497_v3 = vld [vmem:[#allocation8 + $0x38] sm:$0xff]  ;;  %256 = vmatpush.bf16.msra.mxu1 %v489_v2  ;;  %v496_v5 = vld [vmem:[#allocation8 + $0x30] sm:$0xff]  ;;  %v487_v7 = vld [vmem:[#allocation7 + $0x28] sm:$0xff] }
  0x19   :  { %337 = vmatpush.bf16.msra.mxu2 %v497_v3  ;;  %v495_v8 = vld [vmem:[#allocation8 + $0x28] sm:$0xff]  ;;  %v478_v9 = vld [vmem:[#allocation5 + $0x20] sm:$0xff]  ;;  %v477_v12 = vld [vmem:[#allocation5 + $0x18] sm:$0xff] }
  0x1a   :  { %v486_v10 = vld [vmem:[#allocation7 + $0x20] sm:$0xff]  ;;  %v485_v13 = vld [vmem:[#allocation7 + $0x18] sm:$0xff]  ;;  %v476_v15 = vld [vmem:[#allocation5 + $0x10] sm:$0xff] }
  0x1b   :  { %174 = vmatpush.bf16.msra.mxu0 %v480_v1  ;;  %v494_v11 = vld [vmem:[#allocation8 + $0x20] sm:$0xff]  ;;  %v493_v14 = vld [vmem:[#allocation8 + $0x18] sm:$0xff]  ;;  %v484_v16 = vld [vmem:[#allocation7 + $0x10] sm:$0xff] }
  0x1c   :  { %257 = vmatpush.bf16.msra.mxu1 %v488_v4  ;;  %v492_v17 = vld [vmem:[#allocation8 + $0x10] sm:$0xff]  ;;  %v475_v18 = vld [vmem:[#allocation5 + $0x8] sm:$0xff]  ;;  %v474_v19 = vld [vmem:[#allocation5] sm:$0xff] }
  0x1d   :  { %338 = vmatpush.bf16.msra.mxu2 %v496_v5  ;;  %v104_v20 = vld [vmem:[#allocation2] sm:$0xf]  ;;  %v483_v21 = vld [vmem:[#allocation7 + $0x8] sm:$0xff]  ;;  %v482_v23 = vld [vmem:[#allocation7] sm:$0xff] }
  0x1e   :  { %v491_v22 = vld [vmem:[#allocation8 + $0x8] sm:$0xff]  ;;  %v490_v24 = vld [vmem:[#allocation8] sm:$0xff]  ;;  %v506_v25 = vld [vmem:[%s745_s2] ss:$0 sm:$0xff]  ;;  %s670_s2 = smov [#allocation11]  }
  0x1f   :  { %175 = vmatpush.bf16.msra.mxu0 %v479_v6  ;;  %v507_v31 = vld [vmem:[%s748_s5] ss:$0 sm:$0xff]  ;;  %v353_v41 = vld [vmem:[#allocation10] sm:$0xff]  ;;  %s364_s11 = sshll.u32 %s670_s2, 4  ;;  %s365_s11 = int_to_ptr.vmem [resolvable:$true] %s364_s11 }
  0x20   :  { %258 = vmatpush.bf16.msra.mxu1 %v487_v7  ;;  %v508_v34 = vld [vmem:[%s749_s6] ss:$0 sm:$0xff] }
  0x21   :  { %339 = vmatpush.bf16.msra.mxu2 %v495_v8 }
  0x23   :  { %176 = vmatpush.bf16.msra.mxu0 %v478_v9 }
  0x24   :  { %259 = vmatpush.bf16.msra.mxu1 %v486_v10 }
  0x25   :  { %340 = vmatpush.bf16.msra.mxu2 %v494_v11 }
  0x27   :  { %177 = vmatpush.bf16.msra.mxu0 %v477_v12 }
  0x28   :  { %260 = vmatpush.bf16.msra.mxu1 %v485_v13 }
  0x29   :  { %341 = vmatpush.bf16.msra.mxu2 %v493_v14 }
  0x2b   :  { %178 = vmatpush.bf16.msra.mxu0 %v476_v15 }
  0x2c   :  { %261 = vmatpush.bf16.msra.mxu1 %v484_v16 }
  0x2d   :  { %342 = vmatpush.bf16.msra.mxu2 %v492_v17 }
  0x2f   :  { %179 = vmatpush.bf16.msra.mxu0 %v475_v18 }
  0x30   :  { %262 = vmatpush.bf16.msra.mxu1 %v483_v21 }
  0x31   :  { %343 = vmatpush.bf16.msra.mxu2 %v491_v22 }
  0x33   :  { %180 = vmatpush.bf16.msra.mxu0 %v474_v19 }
  0x34   :  { %263 = vmatpush.bf16.msra.mxu1 %v482_v23 }
  0x35   :  { %344 = vmatpush.bf16.msra.mxu2 %v490_v24 }
  0x36   :  { %181 = vmatmul.bf16.vlgmr.msra.gmra.mxu0 %v104_v20 }
  0xb3   :  { %v182_v26 = vpop.f32.mrf.mxu0 }
  0xb4   :  { %v183_v27 = vadd.f32 %v506_v25, %v182_v26 }
  0xb6   :  { %v186_v28 = vmax.f32 %v183_v27, 0.0 }
  0xb8   :  { %v187_v29 = vpack.c.bf16 %v186_v28, %v186_v28 }
  0xba   :  { %264 = vmatmul.bf16.vlgmr.msra.gmra.mxu1 %v187_v29  ;;  %345 = vmatmul.bf16.vlgmr.msra.gmra.mxu2 %v187_v29 }
  0xbb   :  { %v184_v30 = vpop.f32.mrf.mxu0 }
 0x137   :  { %v265_v32 = vpop.f32.mrf.mxu1 }
 0x138   :  { %v266_v33 = vadd.f32 %v507_v31, %v265_v32 }
 0x13a   :  { %357 = vst [vmem:[#allocation11 + $0x8] sm:$0xff] %v266_v33 }
 0x13d   :  { %v346_v35 = vpop.f32.mrf.mxu2 }
 0x13e   :  { %v347_v36 = vadd.f32 %v508_v34, %v346_v35 }
 0x13f   :  { %v267_v37 = vpop.f32.mrf.mxu1 }
 0x140   :  { %v350_v38 = vmul.f32 0.5, %v347_v36  ;;  %358 = vst [vmem:[#allocation11 + $0x10] sm:$0xff] %v347_v36 }
 0x142   :  { %v351_v39 = vmul.f32 1.442695, %v350_v38 }
 0x144   :  { %509 = vpow2.f32 %v351_v39 }
 0x145   :  { %v348_v40 = vpop.f32.mrf.mxu2 }
 0x14a   :  { %v510_v42 = vpop.eup %509 }
 0x14b   :  { %v354_v43 = vmul.f32 %v510_v42, %v353_v41 }
 0x14d   :  { %v355_v44 = vadd.f32 %v354_v43, %v266_v33 }
 0x14f   :  { %356 = vst [vmem:[#allocation11] sm:$0xff] %v355_v44 }
 0x150   :  { %369 = dma.vmem_to_hbm [thread:$0]  %s365_s11, 384, %s367_s13, [#allocation4]  }
 0x151   :  { %661 = dma.done.wait [#allocation4], 384  }
 0x152   :  { %662 = vsyncadd [#allocation4], 4294966912 }
 0x153   :  { %374 = vsyncpa [#allocation3], 1 }
 0x154   :  { %375 = vsyncpa [#allocation6], 1 }
 0x155   :  { %376 = vsyncpa [#allocation9], 1 }
 0x156   :  { %377 = vsyncpa [#allocation4], 1 }

</bundles_post_ra>
